<compile_context>
chip_gen: v7x
topology: tpu7x:2x2x1
jax: 0.10.0
libtpu: 0.0.40
codegen_flags: <defaults>
</compile_context>

<pallas_src>
import functools
import math

import jax
import jax.numpy as jnp
from jax import lax
from jax.experimental import pallas as pl
from jax.experimental.pallas import tpu as pltpu

_MXU_DTYPE = jnp.bfloat16   # MXU operand dtype; accumulation is always f32
_VMEM_LIMIT = 32 * 1024 * 1024


def _iota2(shape, dim):
    return lax.broadcasted_iota(jnp.int32, shape, dim)


# ----------------------------------------------------------------------------
# Fused TemporalBlock kernel (conv1+chomp+relu -> conv2+chomp+relu -> downsample
# -> residual add + ReLU), one pallas_call per block, grid=(B,) parallel.
# ----------------------------------------------------------------------------
def _temporal_block_kernel(x_ref, w1_ref, b1_ref, w2_ref, b2_ref, *rest,
                           L, K, dilation, c_in, c_mid, input_ncl, has_down):
    if has_down:
        wd_ref, bd_ref, o_ref, taps1_ref, taps2_ref = rest
    else:
        o_ref, taps1_ref, taps2_ref = rest

    if input_ncl:
        # Fused NCL -> channels-last transpose, done exactly via an identity matmul
        # (robust NT-form dot_general; rides the MXU instead of an HBM round trip).
        x_ncl = x_ref[0].astype(jnp.float32)                      # (C_in, L)
        eye = jnp.where(_iota2((L, L), 0) == _iota2((L, L), 1), 1.0, 0.0)
        x = lax.dot_general(eye, x_ncl, (((1,), (1,)), ((), ())),
                            preferred_element_type=jnp.float32)   # (L, C_in)
    else:
        x = x_ref[0].astype(jnp.float32)                          # (L, C_in)

    def im2col(src, taps_ref, c):
        # taps[t, j*c + i] = src[t - (K-1-j)*dilation, i]  (zeros where t < shift)
        for j in range(K):
            shift = (K - 1 - j) * dilation
            cols = slice(j * c, (j + 1) * c)
            if shift == 0:
                taps_ref[:, cols] = src
            elif shift >= L:
                taps_ref[:, cols] = jnp.zeros((L, c), taps_ref.dtype)
            else:
                taps_ref[0:shift, cols] = jnp.zeros((shift, c), taps_ref.dtype)
                taps_ref[shift:L, cols] = src[0:L - shift, :]

    # conv1: im2col -> single MXU matmul (contraction depth K*C_in) + bias + ReLU
    im2col(x, taps1_ref, c_in)
    h1 = jnp.dot(taps1_ref[...].astype(_MXU_DTYPE), w1_ref[...],
                 preferred_element_type=jnp.float32) + b1_ref[...]
    h1 = jnp.maximum(h1, 0.0)                                     # dropout = identity

    # conv2: same structure
    im2col(h1, taps2_ref, c_mid)
    h2 = jnp.dot(taps2_ref[...].astype(_MXU_DTYPE), w2_ref[...],
                 preferred_element_type=jnp.float32) + b2_ref[...]
    h2 = jnp.maximum(h2, 0.0)

    # residual path (1x1 downsample if channel count changes)
    if has_down:
        res = jnp.dot(x.astype(_MXU_DTYPE), wd_ref[...],
                      preferred_element_type=jnp.float32) + bd_ref[...]
    else:
        res = x

    o_ref[0] = jnp.maximum(h2 + res, 0.0).astype(o_ref.dtype)


def temporal_block(x, blk, dilation, input_ncl):
    """x: (B, C_in, L) if input_ncl else (B, L, C_in)  ->  (B, L, C_out)."""
    B = x.shape[0]
    K, c_in, c_mid, c_out = blk["K"], blk["c_in"], blk["c_mid"], blk["c_out"]
    L = x.shape[2] if input_ncl else x.shape[1]
    has_down = "wd" in blk

    kernel = functools.partial(_temporal_block_kernel, L=L, K=K, dilation=dilation,
                               c_in=c_in, c_mid=c_mid, input_ncl=input_ncl,
                               has_down=has_down)

    x_block = (1, c_in, L) if input_ncl else (1, L, c_in)
    in_arrays = [x, blk["w1f"], blk["b1"], blk["w2f"], blk["b2"]]
    in_specs = [
        pl.BlockSpec(x_block, lambda b: (b, 0, 0)),
        pl.BlockSpec((K * c_in, c_mid), lambda b: (0, 0)),
        pl.BlockSpec((1, c_mid), lambda b: (0, 0)),
        pl.BlockSpec((K * c_mid, c_out), lambda b: (0, 0)),
        pl.BlockSpec((1, c_out), lambda b: (0, 0)),
    ]
    if has_down:
        in_arrays += [blk["wd"], blk["bd"]]
        in_specs += [pl.BlockSpec((c_in, c_out), lambda b: (0, 0)),
                     pl.BlockSpec((1, c_out), lambda b: (0, 0))]

    return pl.pallas_call(
        kernel,
        out_shape=jax.ShapeDtypeStruct((B, L, c_out), jnp.float32),
        grid=(B,),
        in_specs=in_specs,
        out_specs=pl.BlockSpec((1, L, c_out), lambda b: (b, 0, 0)),
        scratch_shapes=[pltpu.VMEM((L, K * c_in), jnp.float32),
                        pltpu.VMEM((L, K * c_mid), jnp.float32)],
        compiler_params=pltpu.CompilerParams(
            dimension_semantics=("parallel",),
            vmem_limit_bytes=_VMEM_LIMIT),
    )(*in_arrays)


# ----------------------------------------------------------------------------
# Head-batched multi-head attention (shared by self- and cross-attention kernels)
# ----------------------------------------------------------------------------
def _mha_heads(q, k, v, wo_ref, qh_ref, kh_ref, vh_ref, ho_ref, *, num_heads, causal):
    """q: (Lq, E) f32; k, v: (Lk, E) f32.  Returns (proj output (Lq, E) f32,
    head-averaged probs (Lq, Lk) f32).  All matmuls are head-batched / E-deep."""
    Lq, E = q.shape
    Lk = k.shape[0]
    Dh = E // num_heads
    scale = 1.0 / math.sqrt(Dh)

    # Head split = cheap lane-slice copies into (H, L, Dh) VMEM scratch.
    for h in range(num_heads):
        sl = slice(h * Dh, (h + 1) * Dh)
        qh_ref[h] = q[:, sl]
        kh_ref[h] = k[:, sl]
        vh_ref[h] = v[:, sl]

    qh = qh_ref[...].astype(_MXU_DTYPE)                           # (H, Lq, Dh)
    kh = kh_ref[...].astype(_MXU_DTYPE)                           # (H, Lk, Dh)
    vh = vh_ref[...].astype(_MXU_DTYPE)                           # (H, Lk, Dh)

    # Scores for all heads in one batched dot_general.
    s = jnp.einsum("hqd,hkd->hqk", qh, kh,
                   preferred_element_type=jnp.float32) * scale    # (H, Lq, Lk) f32
    if causal:
        s = s + jnp.where(_iota2((Lq, Lk), 0) >= _iota2((Lq, Lk), 1), 0.0, -1e30)

    # Softmax kept entirely in f32 (exact division; v5e has no bf16 VPU/EUP).
    s = s - jnp.max(s, axis=-1, keepdims=True)
    e = jnp.exp(s)
    pr = e / jnp.sum(e, axis=-1, keepdims=True)
    p_avg = jnp.sum(pr, axis=0) * (1.0 / num_heads)               # (Lq, Lk)

    # P @ V for all heads in one batched dot_general.
    ctx = jnp.einsum("hqk,hkd->hqd", pr.astype(_MXU_DTYPE), vh,
                     preferred_element_type=jnp.float32)          # (H, Lq, Dh)

    # Concatenate heads on the lane axis in VMEM, then ONE E-deep output projection.
    for h in range(num_heads):
        ho_ref[:, h * Dh:(h + 1) * Dh] = ctx[h]
    out = jnp.dot(ho_ref[...].astype(_MXU_DTYPE), wo_ref[...],
                  preferred_element_type=jnp.float32)             # (Lq, E)
    return out, p_avg


def _self_attn_kernel(x_ref, wqkv_ref, bqkv_ref, wo_ref, bo_ref,
                      o_ref, p_ref, qh_ref, kh_ref, vh_ref, ho_ref, *, num_heads):
    x = x_ref[0].astype(jnp.float32)                              # (L, E)
    E = x.shape[-1]
    qkv = jnp.dot(x.astype(_MXU_DTYPE), wqkv_ref[...],
                  preferred_element_type=jnp.float32) + bqkv_ref[...]
    attn, p_avg = _mha_heads(qkv[:, 0:E], qkv[:, E:2 * E], qkv[:, 2 * E:3 * E],
                             wo_ref, qh_ref, kh_ref, vh_ref, ho_ref,
                             num_heads=num_heads, causal=True)
    out = x + attn + bo_ref[...]                                  # fused residual add
    o_ref[0] = out.astype(o_ref.dtype)
    p_ref[0] = p_avg.astype(p_ref.dtype)


def _cross_attn_kernel(x_ref, enc_ref, wq_ref, bq_ref, wkv_ref, bkv_ref,
                       wo_ref, bo_ref, bn_scale_ref, bn_shift_ref,
                       o_ref, p_ref, qh_ref, kh_ref, vh_ref, ho_ref, *, num_heads):
    x = x_ref[0].astype(jnp.float32)                              # (Lq, E)
    enc = enc_ref[0].astype(jnp.float32)                          # (Lk, E)
    E = x.shape[-1]
    q = jnp.dot(x.astype(_MXU_DTYPE), wq_ref[...],
                preferred_element_type=jnp.float32) + bq_ref[...]
    kv = jnp.dot(enc.astype(_MXU_DTYPE), wkv_ref[...],
                 preferred_element_type=jnp.float32) + bkv_ref[...]
    attn, p_avg = _mha_heads(q, kv[:, 0:E], kv[:, E:2 * E],
                             wo_ref, qh_ref, kh_ref, vh_ref, ho_ref,
                             num_heads=num_heads, causal=False)
    out = x + attn + bo_ref[...]                                  # (Lq, E), fused residual

    # Fused BatchNorm scale + NLC->NCL transpose in one MXU matmul:
    #   out_ncl[e, t] = bn_scale[e] * out[t, e], then + bn_shift[e].
    # The kernel therefore writes the torch-layout (B, E, L) result directly.
    diag = jnp.where(_iota2((E, E), 0) == _iota2((E, E), 1), bn_scale_ref[...], 0.0)
    out_ncl = lax.dot_general(diag, out, (((1,), (1,)), ((), ())),
                              preferred_element_type=jnp.float32)  # (E, Lq)
    out_ncl = out_ncl + bn_shift_ref[...]                          # (E, 1) lane broadcast
    o_ref[0] = out_ncl.astype(o_ref.dtype)
    p_ref[0] = p_avg.astype(p_ref.dtype)


def self_attention_block(x, p, num_heads):
    """x: (B, L, E) -> (x + MHA(x, x, x, causal), head-averaged attn weights)."""
    B, L, E = x.shape
    Dh = E // num_heads
    return pl.pallas_call(
        functools.partial(_self_attn_kernel, num_heads=num_heads),
        out_shape=(jax.ShapeDtypeStruct((B, L, E), jnp.float32),
                   jax.ShapeDtypeStruct((B, L, L), jnp.float32)),
        grid=(B,),
        in_specs=[
            pl.BlockSpec((1, L, E), lambda b: (b, 0, 0)),
            pl.BlockSpec((E, 3 * E), lambda b: (0, 0)),
            pl.BlockSpec((1, 3 * E), lambda b: (0, 0)),
            pl.BlockSpec((E, E), lambda b: (0, 0)),
            pl.BlockSpec((1, E), lambda b: (0, 0)),
        ],
        out_specs=(pl.BlockSpec((1, L, E), lambda b: (b, 0, 0)),
                   pl.BlockSpec((1, L, L), lambda b: (b, 0, 0))),
        scratch_shapes=[pltpu.VMEM((num_heads, L, Dh), jnp.float32),
                        pltpu.VMEM((num_heads, L, Dh), jnp.float32),
                        pltpu.VMEM((num_heads, L, Dh), jnp.float32),
                        pltpu.VMEM((L, E), jnp.float32)],
        compiler_params=pltpu.CompilerParams(
            dimension_semantics=("parallel",),
            vmem_limit_bytes=_VMEM_LIMIT),
    )(x, p["wqkv"], p["bqkv"], p["wo"], p["bo"])


def cross_attention_block(x, enc, p, num_heads, bn_scale, bn_shift):
    """x: (B, Lq, E), enc: (B, Lk, E) -> (BN(x + MHA(x, enc, enc)) in NCL, avg probs)."""
    B, Lq, E = x.shape
    Lk = enc.shape[1]
    Dh = E // num_heads
    return pl.pallas_call(
        functools.partial(_cross_attn_kernel, num_heads=num_heads),
        out_shape=(jax.ShapeDtypeStruct((B, E, Lq), jnp.float32),
                   jax.ShapeDtypeStruct((B, Lq, Lk), jnp.float32)),
        grid=(B,),
        in_specs=[
            pl.BlockSpec((1, Lq, E), lambda b: (b, 0, 0)),
            pl.BlockSpec((1, Lk, E), lambda b: (b, 0, 0)),
            pl.BlockSpec((E, E), lambda b: (0, 0)),
            pl.BlockSpec((1, E), lambda b: (0, 0)),
            pl.BlockSpec((E, 2 * E), lambda b: (0, 0)),
            pl.BlockSpec((1, 2 * E), lambda b: (0, 0)),
            pl.BlockSpec((E, E), lambda b: (0, 0)),
            pl.BlockSpec((1, E), lambda b: (0, 0)),
            pl.BlockSpec((1, E), lambda b: (0, 0)),
            pl.BlockSpec((E, 1), lambda b: (0, 0)),
        ],
        out_specs=(pl.BlockSpec((1, E, Lq), lambda b: (b, 0, 0)),
                   pl.BlockSpec((1, Lq, Lk), lambda b: (b, 0, 0))),
        scratch_shapes=[pltpu.VMEM((num_heads, Lq, Dh), jnp.float32),
                        pltpu.VMEM((num_heads, Lk, Dh), jnp.float32),
                        pltpu.VMEM((num_heads, Lk, Dh), jnp.float32),
                        pltpu.VMEM((Lq, E), jnp.float32)],
        compiler_params=pltpu.CompilerParams(
            dimension_semantics=("parallel",),
            vmem_limit_bytes=_VMEM_LIMIT),
    )(x, enc, p["wq"], p["bq"], p["wkv"], p["bkv"], p["wo"], p["bo"],
      bn_scale, bn_shift)


# ----------------------------------------------------------------------------
# One-time parameter prep (hoisted out of the forward)
# ----------------------------------------------------------------------------
def prepare_params(params):
    prep = {"tcn": []}
    for blk in params["tcn"]:
        K, c_in, c_mid = blk["w1"].shape
        c_out = blk["w2"].shape[-1]
        pb = {
            "K": K, "c_in": c_in, "c_mid": c_mid, "c_out": c_out,
            "w1f": blk["w1"].reshape(K * c_in, c_mid).astype(_MXU_DTYPE),
            "b1": blk["b1"].reshape(1, c_mid).astype(jnp.float32),
            "w2f": blk["w2"].reshape(K * c_mid, c_out).astype(_MXU_DTYPE),
            "b2": blk["b2"].reshape(1, c_out).astype(jnp.float32),
        }
        if "wd" in blk:
            pb["wd"] = blk["wd"].astype(_MXU_DTYPE)
            pb["bd"] = blk["bd"].reshape(1, c_out).astype(jnp.float32)
        prep["tcn"].append(pb)

    E = params["tcn"][-1]["w2"].shape[-1]
    sa = params["self_attention"]
    prep["self_attention"] = {
        "wqkv": jnp.concatenate([sa["wq"], sa["wk"], sa["wv"]], axis=1).astype(_MXU_DTYPE),
        "bqkv": jnp.concatenate([sa["bq"], sa["bk"], sa["bv"]]).reshape(1, 3 * E).astype(jnp.float32),
        "wo": sa["wo"].astype(_MXU_DTYPE),
        "bo": sa["bo"].reshape(1, E).astype(jnp.float32),
    }
    ca = params["attention"]
    prep["attention"] = {
        "wq": ca["wq"].astype(_MXU_DTYPE),
        "bq": ca["bq"].reshape(1, E).astype(jnp.float32),
        "wkv": jnp.concatenate([ca["wk"], ca["wv"]], axis=1).astype(_MXU_DTYPE),
        "bkv": jnp.concatenate([ca["bk"], ca["bv"]]).reshape(1, 2 * E).astype(jnp.float32),
        "wo": ca["wo"].astype(_MXU_DTYPE),
        "bo": ca["bo"].reshape(1, E).astype(jnp.float32),
    }
    bn = params["norm"]
    scale = bn["gamma"] / jnp.sqrt(bn["var"] + 1e-5)
    prep["bn_scale"] = scale.reshape(1, E).astype(jnp.float32)
    prep["bn_shift"] = (bn["beta"] - bn["mean"] * scale).reshape(E, 1).astype(jnp.float32)
    return prep


# ----------------------------------------------------------------------------
# TCN_Decoder forward (Pallas)
# ----------------------------------------------------------------------------
def tcn_decoder_forward(prepared, encoder_output_ncl, target_ncl, num_heads):
    # Decoder input stays NCL; the first TemporalBlock fuses the NCL->NLC transpose.
    x = target_ncl
    for i, blk in enumerate(prepared["tcn"]):
        x = temporal_block(x, blk, 2 ** i, input_ncl=(i == 0))

    # Encoder memory: one small transpose to channels-last (E on lanes).
    enc = jnp.transpose(encoder_output_ncl, (0, 2, 1))            # (B, L_enc, E)

    # Causal self-attention + residual (fused).
    dec, self_attn = self_attention_block(x, prepared["self_attention"], num_heads)

    # Cross-attention + residual + BatchNorm affine + NCL transpose (fused epilogue).
    # TODO(synk): BatchNorm1d uses inference (running-stats) semantics; training-mode
    # batch statistics / running-stat updates are not reproduced.
    result, cross_attn = cross_attention_block(dec, enc, prepared["attention"],
                                               num_heads, prepared["bn_scale"],
                                               prepared["bn_shift"])
    return result, (self_attn, cross_attn)


# ----------------------------------------------------------------------------
# Pure-JAX f32 reference (correctness check against the Pallas path)
# ----------------------------------------------------------------------------
def _ref_causal_conv(x, w, b, dilation, relu=True):
    B, L, _ = x.shape
    K = w.shape[0]
    pad = (K - 1) * dilation
    xp = jnp.pad(x, ((0, 0), (pad, 0), (0, 0)))
    out = jnp.broadcast_to(b[None, None, :], (B, L, w.shape[-1])).astype(jnp.float32)
    for j in range(K):
        out = out + jnp.einsum("blc,cd->bld", xp[:, j * dilation:j * dilation + L, :], w[j])
    return jnp.maximum(out, 0.0) if relu else out


def _ref_mha(q_in, kv_in, p, H, mask):
    B, Lq, E = q_in.shape
    Lk = kv_in.shape[1]
    Dh = E // H
    q = (q_in @ p["wq"] + p["bq"]).reshape(B, Lq, H, Dh).transpose(0, 2, 1, 3)
    k = (kv_in @ p["wk"] + p["bk"]).reshape(B, Lk, H, Dh).transpose(0, 2, 1, 3)
    v = (kv_in @ p["wv"] + p["bv"]).reshape(B, Lk, H, Dh).transpose(0, 2, 1, 3)
    s = jnp.einsum("bhqd,bhkd->bhqk", q, k) / math.sqrt(Dh) + mask
    pr = jax.nn.softmax(s, axis=-1)
    o = jnp.einsum("bhqk,bhkd->bhqd", pr, v).transpose(0, 2, 1, 3).reshape(B, Lq, E)
    return o @ p["wo"] + p["bo"], pr.mean(axis=1)


def ref_forward(params, encoder_output_ncl, target_ncl, num_heads):
    x = jnp.transpose(target_ncl, (0, 2, 1))
    enc = jnp.transpose(encoder_output_ncl, (0, 2, 1))
    for i, blk in enumerate(params["tcn"]):
        d = 2 ** i
        h = _ref_causal_conv(x, blk["w1"], blk["b1"], d)
        h = _ref_causal_conv(h, blk["w2"], blk["b2"], d)
        res = (x @ blk["wd"] + blk["bd"]) if "wd" in blk else x
        x = jnp.maximum(h + res, 0.0)
    dec = x
    L = dec.shape[1]
    causal_mask = jnp.where(jnp.tril(jnp.ones((L, L), bool)), 0.0, -1e30).astype(jnp.float32)
    zero_mask = jnp.zeros((L, enc.shape[1]), jnp.float32)
    sa, self_attn = _ref_mha(dec, dec, params["self_attention"], num_heads, causal_mask)
    dec = dec + sa
    ca, cross_attn = _ref_mha(dec, enc, params["attention"], num_heads, zero_mask)
    out = jnp.transpose(dec + ca, (0, 2, 1))
    bn = params["norm"]
    result = ((out - bn["mean"][None, :, None]) / jnp.sqrt(bn["var"][None, :, None] + 1e-5)
              * bn["gamma"][None, :, None] + bn["beta"][None, :, None])
    return result, (self_attn, cross_attn)


# ----------------------------------------------------------------------------
# Deterministic synthetic parameters (weight_norm folded into effective weights)
# ----------------------------------------------------------------------------
def init_params(key, input_channels, num_channels, kernel_size):
    keys = iter(jax.random.split(key, 256))

    def nrm(shape, scale=0.05):
        return scale * jax.random.normal(next(keys), shape, jnp.float32)

    tcn = []
    c_in = input_channels
    for c_out in num_channels:
        blk = {"w1": nrm((kernel_size, c_in, c_out)), "b1": nrm((c_out,)),
               "w2": nrm((kernel_size, c_out, c_out)), "b2": nrm((c_out,))}
        if c_in != c_out:
            blk["wd"] = nrm((c_in, c_out))
            blk["bd"] = nrm((c_out,))
        tcn.append(blk)
        c_in = c_out

    E = num_channels[-1]

    def mha_params():
        return {"wq": nrm((E, E)), "bq": nrm((E,)),
                "wk": nrm((E, E)), "bk": nrm((E,)),
                "wv": nrm((E, E)), "bv": nrm((E,)),
                "wo": nrm((E, E)), "bo": nrm((E,))}

    return {
        "tcn": tcn,
        "self_attention": mha_params(),
        "attention": mha_params(),
        "norm": {"gamma": 1.0 + nrm((E,), 0.1), "beta": nrm((E,)),
                 "mean": jnp.zeros((E,), jnp.float32),
                 "var": jnp.ones((E,), jnp.float32)},
    }


if __name__ == "__main__":
    # Small shapes consistent with the module (embed_dim divisible by num_heads).
    input_channels = 1
    num_channels = [16, 16]
    kernel_size = 3
    num_heads = 4
    B, L_dec, L_enc = 2, 16, 8
    E = num_channels[-1]

    key = jax.random.PRNGKey(0)
    kp, ke, kt = jax.random.split(key, 3)
    params = init_params(kp, input_channels, num_channels, kernel_size)
    encoder_output = jax.random.normal(ke, (B, E, L_enc), jnp.float32)       # torch NCL
    target = jax.random.normal(kt, (B, input_channels, L_dec), jnp.float32)  # torch NCL

    prepared = prepare_params(params)
    result, (self_attn, cross_attn) = tcn_decoder_forward(
        prepared, encoder_output, target, num_heads)
    jax.block_until_ready(result)

    r_ref, (sa_ref, ca_ref) = ref_forward(params, encoder_output, target, num_heads)
    assert result.shape == (B, E, L_dec)
    assert self_attn.shape == (B, L_dec, L_dec)
    assert cross_attn.shape == (B, L_dec, L_enc)
    # bf16 MXU operands (f32 accumulation) -> compare against the f32 reference with
    # correspondingly relaxed tolerances.
    assert jnp.allclose(result, r_ref, atol=3e-2, rtol=3e-2)
    assert jnp.allclose(self_attn, sa_ref, atol=1e-2, rtol=1e-2)
    assert jnp.allclose(cross_attn, ca_ref, atol=1e-2, rtol=1e-2)
    print("KERNEL_OK")
</pallas_src>

<mosaic_0001>
module attributes {stable_mosaic.version = 11 : i64} {
  func.func @_temporal_block_kernel(%arg0: i32, %arg1: memref<1x1x16xf32, #tpu.memory_space<vmem>>, %arg2: memref<3x16xbf16, #tpu.memory_space<vmem>>, %arg3: memref<1x16xf32, #tpu.memory_space<vmem>>, %arg4: memref<48x16xbf16, #tpu.memory_space<vmem>>, %arg5: memref<1x16xf32, #tpu.memory_space<vmem>>, %arg6: memref<1x16xbf16, #tpu.memory_space<vmem>>, %arg7: memref<1x16xf32, #tpu.memory_space<vmem>>, %arg8: memref<1x16x16xf32, #tpu.memory_space<vmem>>, %arg9: memref<16x3xf32, #tpu.memory_space<vmem>>, %arg10: memref<16x48xf32, #tpu.memory_space<vmem>>) attributes {dimension_semantics = [#tpu.dimension_semantics<parallel>], iteration_bounds = array<i64: 2>, scalar_prefetch = 0 : i64, scratch_operands = 2 : i64, tpu.core_type = #tpu.core_type<tc>, window_params = [{transform_indices = @transform_0, window_bounds = array<i64: 1, 1, 16>}, {pipeline_mode = #tpu.pipeline_mode<synchronous>, transform_indices = @transform_1, window_bounds = array<i64: 3, 16>}, {pipeline_mode = #tpu.pipeline_mode<synchronous>, transform_indices = @transform_2, window_bounds = array<i64: 1, 16>}, {pipeline_mode = #tpu.pipeline_mode<synchronous>, transform_indices = @transform_3, window_bounds = array<i64: 48, 16>}, {pipeline_mode = #tpu.pipeline_mode<synchronous>, transform_indices = @transform_4, window_bounds = array<i64: 1, 16>}, {pipeline_mode = #tpu.pipeline_mode<synchronous>, transform_indices = @transform_5, window_bounds = array<i64: 1, 16>}, {pipeline_mode = #tpu.pipeline_mode<synchronous>, transform_indices = @transform_6, window_bounds = array<i64: 1, 16>}, {transform_indices = @transform_7, window_bounds = array<i64: 1, 16, 16>}]} {
    %c0 = arith.constant 0 : index
    %c0_0 = arith.constant 0 : index
    %c0_1 = arith.constant 0 : index
    %0 = vector.load %arg1[%c0, %c0_0, %c0_1] : memref<1x1x16xf32, #tpu.memory_space<vmem>>, vector<1x1x16xf32>
    %1 = vector.shape_cast %0 : vector<1x1x16xf32> to vector<1x16xf32>
    %2 = tpu.iota {dimensions = array<i32: 0>} : vector<16x16xi32>
    %3 = tpu.iota {dimensions = array<i32: 1>} : vector<16x16xi32>
    %4 = arith.cmpi eq, %2, %3 : vector<16x16xi32>
    %cst = arith.constant 1.000000e+00 : f32
    %cst_2 = arith.constant 0.000000e+00 : f32
    %5 = vector.broadcast %cst : f32 to vector<16x16xf32>
    %6 = vector.broadcast %cst_2 : f32 to vector<16x16xf32>
    %7 = arith.select %4, %5, %6 : vector<16x16xi1>, vector<16x16xf32>
    %cst_3 = arith.constant dense<0.000000e+00> : vector<16x1xf32>
    %8 = tpu.matmul %7, %1, %cst_3 {dimension_numbers = #tpu.dot_dimension_numbers<[1], [1], [0], [0], [0, 0, 1, 0], [], []>} : vector<16x16xf32>, vector<1x16xf32>, vector<16x1xf32> -> vector<16x1xf32>
    %cst_4 = arith.constant 0.000000e+00 : f32
    %9 = vector.broadcast %cst_4 : f32 to vector<2x1xf32>
    %c0_5 = arith.constant 0 : index
    %c0_6 = arith.constant 0 : index
    %10 = vector.load %arg9[%c0_5, %c0_6] : memref<16x3xf32, #tpu.memory_space<vmem>>, vector<2x1xf32>
    tpu.vector_store %arg9[%c0_5, %c0_6], %9 {strides = array<i32>} : memref<16x3xf32, #tpu.memory_space<vmem>>, vector<2x1xf32>,
    %11 = vector.extract_strided_slice %8 {offsets = [0, 0], sizes = [14, 1], strides = [1, 1]} : vector<16x1xf32> to vector<14x1xf32>
    %c2 = arith.constant 2 : index
    %c0_7 = arith.constant 0 : index
    %12 = vector.load %arg9[%c2, %c0_7] : memref<16x3xf32, #tpu.memory_space<vmem>>, vector<14x1xf32>
    tpu.vector_store %arg9[%c2, %c0_7], %11 {strides = array<i32>} : memref<16x3xf32, #tpu.memory_space<vmem>>, vector<14x1xf32>,
    %cst_8 = arith.constant 0.000000e+00 : f32
    %13 = vector.broadcast %cst_8 : f32 to vector<1x1xf32>
    %c0_9 = arith.constant 0 : index
    %c1 = arith.constant 1 : index
    %14 = vector.load %arg9[%c0_9, %c1] : memref<16x3xf32, #tpu.memory_space<vmem>>, vector<1x1xf32>
    tpu.vector_store %arg9[%c0_9, %c1], %13 {strides = array<i32>} : memref<16x3xf32, #tpu.memory_space<vmem>>, vector<1x1xf32>,
    %15 = vector.extract_strided_slice %8 {offsets = [0, 0], sizes = [15, 1], strides = [1, 1]} : vector<16x1xf32> to vector<15x1xf32>
    %c1_10 = arith.constant 1 : index
    %c1_11 = arith.constant 1 : index
    %16 = vector.load %arg9[%c1_10, %c1_11] : memref<16x3xf32, #tpu.memory_space<vmem>>, vector<15x1xf32>
    tpu.vector_store %arg9[%c1_10, %c1_11], %15 {strides = array<i32>} : memref<16x3xf32, #tpu.memory_space<vmem>>, vector<15x1xf32>,
    %c0_12 = arith.constant 0 : index
    %c2_13 = arith.constant 2 : index
    %17 = vector.load %arg9[%c0_12, %c2_13] : memref<16x3xf32, #tpu.memory_space<vmem>>, vector<16x1xf32>
    tpu.vector_store %arg9[%c0_12, %c2_13], %8 {strides = array<i32>} : memref<16x3xf32, #tpu.memory_space<vmem>>, vector<16x1xf32>,
    %c0_14 = arith.constant 0 : index
    %c0_15 = arith.constant 0 : index
    %18 = vector.load %arg9[%c0_14, %c0_15] : memref<16x3xf32, #tpu.memory_space<vmem>>, vector<16x3xf32>
    %19 = arith.truncf %18 : vector<16x3xf32> to vector<16x3xbf16>
    %c0_16 = arith.constant 0 : index
    %c0_17 = arith.constant 0 : index
    %20 = vector.load %arg2[%c0_16, %c0_17] : memref<3x16xbf16, #tpu.memory_space<vmem>>, vector<3x16xbf16>
    %cst_18 = arith.constant dense<0.000000e+00> : vector<16x16xf32>
    %21 = tpu.matmul %19, %20, %cst_18 {dimension_numbers = #tpu.dot_dimension_numbers<[1], [0], [0], [1], [0, 0, 1, 1], [], []>} : vector<16x3xbf16>, vector<3x16xbf16>, vector<16x16xf32> -> vector<16x16xf32>
    %c0_19 = arith.constant 0 : index
    %c0_20 = arith.constant 0 : index
    %22 = vector.load %arg3[%c0_19, %c0_20] : memref<1x16xf32, #tpu.memory_space<vmem>>, vector<1x16xf32>
    %23 = vector.broadcast %22 : vector<1x16xf32> to vector<16x16xf32>
    %24 = arith.addf %21, %23 : vector<16x16xf32>
    %cst_21 = arith.constant 0.000000e+00 : f32
    %25 = vector.broadcast %cst_21 : f32 to vector<16x16xf32>
    %26 = arith.maximumf %24, %25 : vector<16x16xf32>
    %cst_22 = arith.constant 0.000000e+00 : f32
    %27 = vector.broadcast %cst_22 : f32 to vector<2x16xf32>
    %c0_23 = arith.constant 0 : index
    %c0_24 = arith.constant 0 : index
    %28 = vector.load %arg10[%c0_23, %c0_24] : memref<16x48xf32, #tpu.memory_space<vmem>>, vector<2x16xf32>
    tpu.vector_store %arg10[%c0_23, %c0_24], %27 {strides = array<i32>} : memref<16x48xf32, #tpu.memory_space<vmem>>, vector<2x16xf32>,
    %29 = vector.extract_strided_slice %26 {offsets = [0, 0], sizes = [14, 16], strides = [1, 1]} : vector<16x16xf32> to vector<14x16xf32>
    %c2_25 = arith.constant 2 : index
    %c0_26 = arith.constant 0 : index
    %30 = vector.load %arg10[%c2_25, %c0_26] : memref<16x48xf32, #tpu.memory_space<vmem>>, vector<14x16xf32>
    tpu.vector_store %arg10[%c2_25, %c0_26], %29 {strides = array<i32>} : memref<16x48xf32, #tpu.memory_space<vmem>>, vector<14x16xf32>,
    %cst_27 = arith.constant 0.000000e+00 : f32
    %31 = vector.broadcast %cst_27 : f32 to vector<1x16xf32>
    %c0_28 = arith.constant 0 : index
    %c16 = arith.constant 16 : index
    %32 = vector.load %arg10[%c0_28, %c16] : memref<16x48xf32, #tpu.memory_space<vmem>>, vector<1x16xf32>
    tpu.vector_store %arg10[%c0_28, %c16], %31 {strides = array<i32>} : memref<16x48xf32, #tpu.memory_space<vmem>>, vector<1x16xf32>,
    %33 = vector.extract_strided_slice %26 {offsets = [0, 0], sizes = [15, 16], strides = [1, 1]} : vector<16x16xf32> to vector<15x16xf32>
    %c1_29 = arith.constant 1 : index
    %c16_30 = arith.constant 16 : index
    %34 = vector.load %arg10[%c1_29, %c16_30] : memref<16x48xf32, #tpu.memory_space<vmem>>, vector<15x16xf32>
    tpu.vector_store %arg10[%c1_29, %c16_30], %33 {strides = array<i32>} : memref<16x48xf32, #tpu.memory_space<vmem>>, vector<15x16xf32>,
    %c0_31 = arith.constant 0 : index
    %c32 = arith.constant 32 : index
    %35 = vector.load %arg10[%c0_31, %c32] : memref<16x48xf32, #tpu.memory_space<vmem>>, vector<16x16xf32>
    tpu.vector_store %arg10[%c0_31, %c32], %26 {strides = array<i32>} : memref<16x48xf32, #tpu.memory_space<vmem>>, vector<16x16xf32>,
    %c0_32 = arith.constant 0 : index
    %c0_33 = arith.constant 0 : index
    %36 = vector.load %arg10[%c0_32, %c0_33] : memref<16x48xf32, #tpu.memory_space<vmem>>, vector<16x48xf32>
    %37 = arith.truncf %36 : vector<16x48xf32> to vector<16x48xbf16>
    %c0_34 = arith.constant 0 : index
    %c0_35 = arith.constant 0 : index
    %38 = vector.load %arg4[%c0_34, %c0_35] : memref<48x16xbf16, #tpu.memory_space<vmem>>, vector<48x16xbf16>
    %cst_36 = arith.constant dense<0.000000e+00> : vector<16x16xf32>
    %39 = tpu.matmul %37, %38, %cst_36 {dimension_numbers = #tpu.dot_dimension_numbers<[1], [0], [0], [1], [0, 0, 1, 1], [], []>} : vector<16x48xbf16>, vector<48x16xbf16>, vector<16x16xf32> -> vector<16x16xf32>
    %c0_37 = arith.constant 0 : index
    %c0_38 = arith.constant 0 : index
    %40 = vector.load %arg5[%c0_37, %c0_38] : memref<1x16xf32, #tpu.memory_space<vmem>>, vector<1x16xf32>
    %41 = vector.broadcast %40 : vector<1x16xf32> to vector<16x16xf32>
    %42 = arith.addf %39, %41 : vector<16x16xf32>
    %cst_39 = arith.constant 0.000000e+00 : f32
    %43 = vector.broadcast %cst_39 : f32 to vector<16x16xf32>
    %44 = arith.maximumf %42, %43 : vector<16x16xf32>
    %45 = arith.truncf %8 : vector<16x1xf32> to vector<16x1xbf16>
    %c0_40 = arith.constant 0 : index
    %c0_41 = arith.constant 0 : index
    %46 = vector.load %arg6[%c0_40, %c0_41] : memref<1x16xbf16, #tpu.memory_space<vmem>>, vector<1x16xbf16>
    %cst_42 = arith.constant dense<0.000000e+00> : vector<16x16xf32>
    %47 = tpu.matmul %45, %46, %cst_42 {dimension_numbers = #tpu.dot_dimension_numbers<[1], [0], [0], [1], [0, 0, 1, 1], [], []>} : vector<16x1xbf16>, vector<1x16xbf16>, vector<16x16xf32> -> vector<16x16xf32>
    %c0_43 = arith.constant 0 : index
    %c0_44 = arith.constant 0 : index
    %48 = vector.load %arg7[%c0_43, %c0_44] : memref<1x16xf32, #tpu.memory_space<vmem>>, vector<1x16xf32>
    %49 = vector.broadcast %48 : vector<1x16xf32> to vector<16x16xf32>
    %50 = arith.addf %47, %49 : vector<16x16xf32>
    %51 = arith.addf %44, %50 : vector<16x16xf32>
    %cst_45 = arith.constant 0.000000e+00 : f32
    %52 = vector.broadcast %cst_45 : f32 to vector<16x16xf32>
    %53 = arith.maximumf %51, %52 : vector<16x16xf32>
    %c0_46 = arith.constant 0 : index
    %c0_47 = arith.constant 0 : index
    %c0_48 = arith.constant 0 : index
    %54 = vector.load %arg8[%c0_46, %c0_47, %c0_48] : memref<1x16x16xf32, #tpu.memory_space<vmem>>, vector<1x16x16xf32>
    %55 = vector.shape_cast %54 : vector<1x16x16xf32> to vector<16x16xf32>
    %56 = vector.shape_cast %53 : vector<16x16xf32> to vector<1x16x16xf32>
    tpu.vector_store %arg8[%c0_46, %c0_47, %c0_48], %56 {strides = array<i32>} : memref<1x16x16xf32, #tpu.memory_space<vmem>>, vector<1x16x16xf32>,
    return
  }
  func.func @transform_0(%arg0: i32) -> (i32, i32, i32) {
    %c0_i32 = arith.constant 0 : i32
    %c0_i32_0 = arith.constant 0 : i32
    %c0_i32_1 = arith.constant 0 : i32
    return %arg0, %c0_i32, %c0_i32_0 : i32, i32, i32
  }
  func.func @transform_1(%arg0: i32) -> (i32, i32) {
    %c0_i32 = arith.constant 0 : i32
    %c0_i32_0 = arith.constant 0 : i32
    %c0_i32_1 = arith.constant 0 : i32
    return %c0_i32, %c0_i32_0 : i32, i32
  }
  func.func @transform_2(%arg0: i32) -> (i32, i32) {
    %c0_i32 = arith.constant 0 : i32
    %c0_i32_0 = arith.constant 0 : i32
    %c0_i32_1 = arith.constant 0 : i32
    return %c0_i32, %c0_i32_0 : i32, i32
  }
  func.func @transform_3(%arg0: i32) -> (i32, i32) {
    %c0_i32 = arith.constant 0 : i32
    %c0_i32_0 = arith.constant 0 : i32
    %c0_i32_1 = arith.constant 0 : i32
    return %c0_i32, %c0_i32_0 : i32, i32
  }
  func.func @transform_4(%arg0: i32) -> (i32, i32) {
    %c0_i32 = arith.constant 0 : i32
    %c0_i32_0 = arith.constant 0 : i32
    %c0_i32_1 = arith.constant 0 : i32
    return %c0_i32, %c0_i32_0 : i32, i32
  }
  func.func @transform_5(%arg0: i32) -> (i32, i32) {
    %c0_i32 = arith.constant 0 : i32
    %c0_i32_0 = arith.constant 0 : i32
    %c0_i32_1 = arith.constant 0 : i32
    return %c0_i32, %c0_i32_0 : i32, i32
  }
  func.func @transform_6(%arg0: i32) -> (i32, i32) {
    %c0_i32 = arith.constant 0 : i32
    %c0_i32_0 = arith.constant 0 : i32
    %c0_i32_1 = arith.constant 0 : i32
    return %c0_i32, %c0_i32_0 : i32, i32
  }
  func.func @transform_7(%arg0: i32) -> (i32, i32, i32) {
    %c0_i32 = arith.constant 0 : i32
    %c0_i32_0 = arith.constant 0 : i32
    %c0_i32_1 = arith.constant 0 : i32
    return %arg0, %c0_i32, %c0_i32_0 : i32, i32, i32
  }
}

</mosaic_0001>

<bundles_post_ra>
// kernel: tpu_custom_call.1
= control target key start
LH: loop header
LB: loop body
LE: loop exit
PB: predicated region body
PF: predicated region fallthrough
CT: control target
= control target key end

     0   :  { %12 = vsyncpa [#allocation5], 0  ;;  %s990_s0 = inlined_call_operand.vmem [shape: f32[2,1,16], index: 0, kind: input, shape index: {}]   ;;  %s991_s1 = inlined_call_operand.vmem [shape: bf16[3,16], index: 1, kind: input, shape index: {}]   ;;  %s992_s2 = inlined_call_operand.vmem [shape: f32[1,16], index: 2, kind: input, shape index: {}]   ;;  %s993_s3 = inlined_call_operand.vmem [shape: bf16[48,16], index: 3, kind: input, shape index: {}]   ;;  %s994_s4 = inlined_call_operand.vmem [shape: f32[1,16], index: 4, kind: input, shape index: {}]   ;;  %s995_s5 = inlined_call_operand.vmem [shape: bf16[1,16], index: 5, kind: input, shape index: {}]   ;;  %s996_s6 = inlined_call_operand.vmem [shape: f32[1,16], index: 6, kind: input, shape index: {}]   ;;  %s997_s7 = inlined_call_operand.hbm [shape: f32[2,16,16], index: 7, kind: output, shape index: {}]  }
   0x1   :  { %14 = vsyncpa [#allocation5 + $0x1], 0  ;;  %s837_s24 = smov 0   ;;  %s839_s25 = smov 0  }
   0x2   :  { %s841_s26 = smov 0   ;;  %s843_s27 = smov 0  }
   0x3 LB: > { %s858_s28 = sadd.s32 4294967295, %s786_s27   ;;  %s623_s29 = sadd.s32 4294967294, %s786_s27   ;;  %s786_s27 = sphi %s843_s27, %s1003_s27   ;;  %s782_s26 = sphi %s841_s26, %s1002_s26   ;;  %s778_s25 = sphi %s839_s25, %s1001_s25   ;;  %s774_s24 = sphi %s837_s24, %s1000_s24  }
   0x4   : > { %s862_s30 = sadd.s32 1, %s786_s27   ;;  %s179_s8 = sadd.s32 1, %s782_s26 }
   0x5   : > { %s176_s9 = ssub.s32 %s786_s27, %s862_s30  ;;  %p189_p0 = scmp.ne.s32.totalorder %s782_s26, %s778_s25 }
   0x6   : > { %p177_p1 = scmp.eq.s32.totalorder %s176_s9, 0  ;;  %p190_p2 = scmp.eq.s32.totalorder %s858_s28, 1 }
   0x7   : > { %p195_p3 = scmp.ne.s32.totalorder %s778_s25, %s774_s24  ;;  %p196_p4 = scmp.eq.s32.totalorder %s623_s29, 1 }
   0x8   : > { %s873_s10 = scalar_select %p177_p1, %s782_s26, %s179_s8  }
   0x9   : > { %p875_p5 = por %p190_p2, %p189_p0  ;;  %p879_p6 = por %p196_p4, %p195_p3 }
   0xa   : > { %p626_p7 = scmp.ge.s32.totalorder %s786_s27, 1  ;;  %p238_p8 = scmp.lt.s32.totalorder %s786_s27, 3 }
   0xc   : > { %p239_p9 = pnand %p626_p7, %p238_p8 }
   0xd   : > { %p268_p10 = scmp.lt.s32.totalorder (!%p239_p9), %s858_s28, 1  ;;  %v273_v0 = vlaneseq (!%p239_p9)  ;;  %vm297_vm0 = vcmask (!%p239_p9), 1024   ;;  %v788_v1 = vmov (!%p239_p9), 0.0   ;;  %vm303_vm1 = vcmask (!%p239_p9), 8200   ;;  %v315_v12 = vld [vmem:[%s991_s1] sm:$0x3] (!%p239_p9) }
   0xe   : > { %242 = sbr.rel (%p239_p9) target bundleno = 772 (0x304), region = 48  ;;  %298 = vst.msk [vmem:[#allocation2] sm:$0x3] (!%p239_p9), %vm297_vm0, %v788_v1  ;;  %652 = vmatprep.subr.bf16.mxu0 (!%p239_p9), %v788_v1  ;;  %658 = vmatprep.subr.bf16.mxu1 (!%p239_p9), %v788_v1  ;;  %vm290_vm3 = vcmask (!%p239_p9), 130048   ;;  %vm327_vm5 = vcmask (!%p239_p9), 1040384   ;;  %vm328_vm6 = vcmask (!%p239_p9), 1041408  }
   0xf   : > { %v274_v2 = vshrl.u32 (!%p239_p9), %v273_v0, 7  ;;  %v277_v3 = vand.u32 (!%p239_p9), 127, %v273_v0  ;;  %304 = vst.msk [vmem:[#allocation2] sm:$0x1] (!%p239_p9), %vm303_vm1, %v788_v1  ;;  %v789_v13 = vmov (!%p239_p9), 65535   ;;  %vm790_vm7 = vmmov (!%p239_p9), 0  }
  0x10   : > { %v329_v14 = vsel (!%p239_p9), %vm327_vm5, 4294967295, %v789_v13  ;;  %654 = vmatprep.mubr.msk.bf16.mxu0 (!%p239_p9), %vm790_vm7, %v788_v1  ;;  %664 = vmatprep.mubr.msk.bf16.mxu1 (!%p239_p9), %vm790_vm7, %v788_v1  ;;  %vm299_vm8 = vcmask (!%p239_p9), 7168   ;;  %vm305_vm9 = vcmask (!%p239_p9), 15368   ;;  %vm309_vm10 = vcmask (!%p239_p9), 23568   ;;  %v487_v19 = vld [vmem:[%s995_s5] sm:$0x1] (!%p239_p9) }
  0x11   : > { %vm278_vm2 = vcmp.eq.s32.totalorder (!%p239_p9), %v274_v2, %v277_v3  ;;  %v275_v4 = vadd.s32 (!%p239_p9), 8, %v274_v2  ;;  %v330_v15 = vsel (!%p239_p9), %vm328_vm6, %v329_v14, 0  ;;  %vm301_vm11 = vcmask (!%p239_p9), 5120   ;;  %v721_v27 = vld [vmem:[%s993_s3] sm:$0xff] (!%p239_p9)   ;;  %v722_v30 = vld [vmem:[%s993_s3 + $0x8] sm:$0xff] (!%p239_p9)   ;;  %v723_v34 = vld [vmem:[%s993_s3 + $0x10] sm:$0xff] (!%p239_p9)  }
  0x12   : > { %v280_v6 = vsel (!%p239_p9), %vm278_vm2, 1.0, %v788_v1  ;;  %v332_v16 = vand.u32 (!%p239_p9), %v330_v15, %v315_v12  ;;  %vm307_vm12 = vcmask (!%p239_p9), 14344   ;;  %v791_v20 = vmov (!%p239_p9), 0   ;;  %v629_v28 = vld [vmem:[%s992_s2] ss:$0 sm:$0xff] (!%p239_p9)  ;;  %659 = vmatpush3.bf16.msra.mxu1 (!%p239_p9), %v721_v27  ;;  %s792_s15 = smov (!%p239_p9), 32  }
  0x13   : > { %vm279_vm4 = vcmp.eq.s32.totalorder (!%p239_p9), %v275_v4, %v277_v3  ;;  %v499_v21 = vsel (!%p239_p9), %vm327_vm5, 65535, %v791_v20  ;;  %vm323_vm13 = vcmask (!%p239_p9), 23552   ;;  %vm377_vm14 = vcmask (!%p239_p9), 123904   ;;  %660 = vmatprep.subr.bf16.mxu1 (!%p239_p9), %v788_v1  ;;  %s265_s17 = sand.u32 (!%p239_p9), 1, %s778_s25   ;;  %v631_v50 = vld [vmem:[%s994_s4] ss:$0 sm:$0xff] (!%p239_p9) }
  0x14   : > { %v281_v8 = vsel (!%p239_p9), %vm279_vm4, 1.0, %v788_v1  ;;  %653 = vmatpush3.bf16.msra.mxu0 (!%p239_p9), %v332_v16  ;;  %v501_v22 = vand.u32 (!%p239_p9), %v499_v21, %v487_v19  ;;  %378 = vst.msk [vmem:[#allocation3] sm:$0x3] (!%p239_p9), %vm377_vm14, %v788_v1  ;;  %vm382_vm15 = vcmask (!%p239_p9), 254080   ;;  %vm380_vm0 = vcmask (!%p239_p9), 128000   ;;  %s627_s20 = sshll.u32 (!%p239_p9), %s265_s17, 4 }
  0x15   : > { %s269_s13 = scalar_select %p268_p10, %s858_s28, 1  ;;  %668 = vmatprep.subr.bf16.mxu0 %v788_v1  ;;  %383 = vst.msk [vmem:[#allocation3] sm:$0x1] %vm382_vm15, %v788_v1  ;;  %vm392_vm1 = vcmask 261248   ;;  %vm402_vm2 = vcmask 392448   ;;  %vm394_vm4 = vcmask 260224  }
  0x16   : > { %661 = vmatpush3.bf16.msra.mxu1 %v722_v30  ;;  %vm439_vm5 = vcmask 392192   ;;  %v636_v51 = vld [vmem:[%s996_s6] ss:$0 sm:$0xff]  ;;  %s643_s23 = sshll.u32 %s858_s28, 8  ;;  %s267_s29 = scalar_lea.vmem [#allocation4], %s627_s20 }
  0x17   : > { %s270_s16 = scalar_lea.vmem %s990_s0, %s269_s13  ;;  %662 = vmatprep.subr.bf16.mxu1 %v788_v1  ;;  %s564_s8 = sshll.u32 %s267_s29, 4  ;;  %s945_s8 = int_to_ptr.vmem [resolvable:$true] %s564_s8 }
  0x18   : > { %v628_v5 = vld [vmem:[%s270_s16] ss:$0 sm:$0xff]  ;;  %s793_s16 = smov 16   ;;  %s943_s14 = scalar_lea.hbm %s997_s7, %s643_s23 }
  0x19   : > { %v288_v7 = vmul.f32 %v628_v5, %v280_v6  ;;  %v289_v10 = vmul.f32 %v628_v5, %v281_v8  ;;  %s949_s28 = scalar_lea.sflag [#allocation5], %s265_s17 }
  0x1a   : > { %663 = vmatpush3.bf16.msra.mxu1 %v723_v34 }
  0x1b   : > { %v291_v9 = vsel %vm290_vm3, %v288_v7, 0.0  ;;  %v294_v11 = vsel %vm290_vm3, %v289_v10, 0.0 }
  0x1c   : > { %292 = vadd.xlane.f32.xlu0 %v291_v9 }
  0x20   : > { %295 = vadd.xlane.f32.xlu0 %v294_v11 }
  0xa9   : > { %v293_v17 = vpop.xlane.xlu0 %292 }
  0xaa   : > { %300 = vst.msk [vmem:[#allocation2 + $0x2] sm:$0xff] %vm299_vm8, %v293_v17 }
  0xab   : > { %306 = vst.msk [vmem:[#allocation2 + $0x1] sm:$0xff] %vm305_vm9, %v293_v17 }
  0xac   : > { %310 = vst.msk [vmem:[#allocation2] sm:$0xff] %vm309_vm10, %v293_v17 }
  0xad   : > { %v296_v18 = vpop.xlane.xlu0 %295 }
  0xae   : > { %302 = vst.msk [vmem:[#allocation2 + $0xa] sm:$0x3f] %vm301_vm11, %v296_v18  ;;  %v486_v26 = vpack.c.bf16 %v296_v18, %v293_v17 }
  0xaf   : > { %308 = vst.msk [vmem:[#allocation2 + $0x9] sm:$0x7f] %vm307_vm12, %v296_v18 }
  0xb0   : > { %311 = vst.msk [vmem:[#allocation2 + $0x8] sm:$0xff] %vm309_vm10, %v296_v18 }
  0xb3   : > { %v312_v23 = vld [vmem:[#allocation2] sm:$0xff] }
  0xb7   : > { %v313_v24 = vld [vmem:[#allocation2 + $0x8] sm:$0xff] }
  0xb8   : > { %v314_v25 = vpack.c.bf16 %v313_v24, %v312_v23 }
  0xba   : > { %655 = vmatmul.mubr.msk.bf16.vlgmr.msra.gmra.mrb[0].mxu0 %vm323_vm13, %v314_v25 }
  0xbb   : > { %669 = vmatpush3.bf16.msra.mxu0 %v501_v22  ;;  %670 = vmatprep.mubr.msk.bf16.mxu0 %vm790_vm7, %v788_v1 }
  0xc2   : > { %671 = vmatmul.mubr.msk.bf16.vlgmr.msra.gmra.mrb[4].mxu0 %vm299_vm8, %v486_v26 }
 0x18d   : > { %v368_v29 = vpop.f32.mrb[0].mxu0 }
 0x18e   : > { %v369_v31 = vadd.f32 %v629_v28, %v368_v29  ;;  %v656_v32 = vpop.f32.mrb[1].mxu0 }
 0x18f   : > { %v371_v33 = vpop.f32.mrb[2].mxu0 }
 0x190   : > { %v375_v35 = vmax.f32 %v369_v31, 0.0  ;;  %v372_v36 = vadd.f32 %v629_v28, %v371_v33  ;;  %v657_v37 = vpop.f32.mrb[3].mxu0 }
 0x192   : > { %379 = vst.msk [vmem:[#allocation3 + $0x2] sm:$0xff] %vm290_vm3, %v375_v35  ;;  %v376_v38 = vmax.f32 %v372_v36, 0.0  ;;  %396 = vrot.lane.b32.xlu0 %v375_v35, %s792_s15  ;;  %386 = vrot.lane.b32.xlu1 %v375_v35, %s793_s16 }
 0x194   : > { %381 = vst.msk [vmem:[#allocation3 + $0xa] sm:$0x3f] %vm380_vm0, %v376_v38 }
 0x195   : > { %v537_v39 = vpop.f32.mrb[4].mxu0 }
 0x196   : > { %388 = vrot.lane.b32.xlu1 %v376_v38, %s793_s16  ;;  %v672_v40 = vpop.f32.mrb[5].mxu0  ;;  %v538_v56 = vadd.f32 %v636_v51, %v537_v39  ;;  %s794_s16 = smov [#allocation4]  }
 0x197   : > { %v540_v41 = vpop.f32.mrb[6].mxu0  ;;  %s728_s18 = sshll.u32 %s794_s16, 4  ;;  %s729_s18 = int_to_ptr.vmem [resolvable:$false] %s728_s18 }
 0x198   : > { %v673_v42 = vpop.f32.mrb[7].mxu0  ;;  %v541_v60 = vadd.f32 %v636_v51, %v540_v41  ;;  %s730_s19 = scalar_lea.vmem %s729_s18, 512  ;;  %p731_p0 = scmp.lt.s32.totalorder %s945_s8, %s729_s18 }
 0x19a   : > { %398 = vrot.lane.b32.xlu1 %v376_v38, %s792_s15  ;;  %s724_s15 = scalar_lea.vmem %s945_s8, 256 }
 0x19b   : > { %p725_p11 = scmp.ne.s32.totalorder %s945_s8, %s724_s15  ;;  %p732_p1 = scmp.lt.s32.totalorder %s730_s19, %s724_s15 }
 0x19d   : > { %p726_p12 = pnand %p725_p11, %p875_p5  ;;  %p733_p2 = por %p732_p1, %p731_p0 }
 0x19f   : > { %p727_p13 = pneg %p726_p12 }
 0x1a1   : > { %p734_p3 = pnand %p733_p2, %p727_p13 }
 0x204   : > { %v397_v43 = vpop.permute.xlu0 %396  ;;  %v387_v44 = vpop.permute.xlu1 %386 }
 0x205   : > { %393 = vst.msk [vmem:[#allocation3 + $0x1] sm:$0xff] %vm392_vm1, %v387_v44 }
 0x206   : > { %403 = vst.msk [vmem:[#allocation3] sm:$0xff] %vm402_vm2, %v397_v43 }
 0x208   : > { %v389_v45 = vpop.permute.xlu1 %388 }
 0x209   : > { %395 = vst.msk [vmem:[#allocation3 + $0x9] sm:$0x7f] %vm394_vm4, %v389_v45 }
 0x20c   : > { %v399_v46 = vpop.permute.xlu1 %398 }
 0x20d   : > { %404 = vst.msk [vmem:[#allocation3 + $0x8] sm:$0xff] %vm402_vm2, %v399_v46  ;;  %v405_v47 = vld [vmem:[#allocation3] sm:$0xff] }
 0x214   : > { %v406_v48 = vld [vmem:[#allocation3 + $0x8] sm:$0xff] }
 0x215   : > { %v407_v49 = vpack.c.bf16 %v406_v48, %v405_v47 }
 0x217   : > { %665 = vmatmul.mubr.msk.bf16.vlgmr.msra.gmra.mrb[0].mxu1 %vm439_vm5, %v407_v49 }
 0x2ea   : > { %v477_v52 = vpop.f32.mrb[0].mxu1 }
 0x2eb   : > { %v478_v53 = vadd.f32 %v631_v50, %v477_v52  ;;  %v666_v54 = vpop.f32.mrb[1].mxu1 }
 0x2ec   : > { %v480_v55 = vpop.f32.mrb[2].mxu1 }
 0x2ed   : > { %v484_v57 = vmax.f32 %v478_v53, 0.0  ;;  %v481_v58 = vadd.f32 %v631_v50, %v480_v55  ;;  %v667_v59 = vpop.f32.mrb[3].mxu1 }
 0x2ef   : > { %v544_v61 = vadd.f32 %v538_v56, %v484_v57  ;;  %v485_v62 = vmax.f32 %v481_v58, 0.0 }
 0x2f1   : > { %v546_v63 = vmax.f32 %v544_v61, 0.0  ;;  %v545_v0 = vadd.f32 %v541_v60, %v485_v62 }
 0x2f3   : > { %548 = vst.msk [vmem:[%s267_s29] sm:$0xff] %vm290_vm3, %v546_v63  ;;  %v547_v1 = vmax.f32 %v545_v0, 0.0 }
 0x2f5   : > { %549 = vst.msk [vmem:[%s267_s29 + $0x8] sm:$0xff] %vm290_vm3, %v547_v1 }
 0x2f6   : > { %737 = shalt.err (!%p734_p3)
}
 0x2f7   : > { %s738_s17 = scalar_lea.hbm %s943_s14, 256  ;;  %s742_s22 = scalar_lea.hbm %s997_s7, 512 }
 0x2f8   : > { %p739_p4 = scmp.ne.s32.totalorder %s943_s14, %s738_s17  ;;  %p743_p9 = scmp.lt.u32.totalorder %s943_s14, %s997_s7 }
 0x2f9   : > { %p744_p10 = scmp.lt.u32.totalorder %s742_s22, %s738_s17  ;;  %p746_p12 = scmp.lt.u32.totalorder %s738_s17, %s943_s14 }
 0x2fa   : > { %p740_p7 = pnand %p739_p4, %p875_p5 }
 0x2fb   : > { %p745_p11 = por %p744_p10, %p743_p9 }
 0x2fc   : > { %p741_p8 = pneg %p740_p7 }
 0x2fd   : > { %p747_p13 = por %p746_p12, %p745_p11 }
 0x2ff   : > { %p748_p0 = pnand %p747_p13, %p741_p8 }
 0x301   : > { %751 = shalt.err (!%p748_p0)
}
 0x302   : > { %s795_s9 = smov 128   ;;  %s796_s13 = smov 8  }
 0x303   : > { %674 = dma.vmem_to_hbm [thread:$0]  (%p875_p5), %s945_s8, 256, %s943_s14, %s949_s28, %s795_s9, %s795_s9, %s796_s13  }
 0x304 PF: > { %p680_p1 = scmp.ge.s32.totalorder %s786_s27, 2  ;;  %s579_s15 = sand.u32 1, %s774_s24  }
 0x305   : > { %s580_s16 = scalar_lea.sflag [#allocation5], %s579_s15 }
 0x306   : > { %p677_p2 = pnand %p680_p1, %p879_p6 }
 0x308   : > { %769 = dma.done.wait (!%p677_p2), %s580_s16, 256  }
 0x309   : > { %771 = vsyncadd (!%p677_p2), %s580_s16, 4294967040  ;;  %p17_p3 = scmp.ge.s32.totalorder %s862_s30, 4   ;;  %s1000_s24 = smov %s778_s25 }
 0x30a   : > { %s1001_s25 = smov %s782_s26  ;;  %s1002_s26 = smov %s873_s10 }
 0x30b   : > { %s1003_s27 = smov %s862_s30  ;;  %19 = sbr.rel (!%p17_p3) target bundleno = 3 (0x3), region = 83 }
 0x312   :  { %585 = vsyncpa [#allocation5], 1 }
 0x313   :  { %587 = vsyncpa [#allocation5 + $0x1], 1 }

</bundles_post_ra>
